<compile_context>
chip_gen: v5e
topology: v5e:2x2
jax: 0.10.0
libtpu: 0.0.40
codegen_flags: <defaults>
</compile_context>

<pallas_src>
import jax
import jax.numpy as jnp
from jax.experimental import pallas as pl
from jax.experimental.pallas import tpu as pltpu

_MAX_TM = 2048       # max rows per grid step (multiple of 8); ~2-3 MiB VMEM/tile.
_MIN_GRID_STEPS = 2  # guarantee >= 2 steps so v7x megacore gets both TCs busy.


def _round_up(n, m):
    return ((n + m - 1) // m) * m


def _pick_tile(B):
    # Biggest tile <= _MAX_TM that still yields >= _MIN_GRID_STEPS grid steps.
    tm = min(_MAX_TM, _round_up(pl.cdiv(B, _MIN_GRID_STEPS), 8))
    return max(tm, 8)


def _pad_hidden(w1, b1, w2):
    """Zero-pad the hidden dim to a multiple of 128 (numerically identical)."""
    D, H = w1.shape
    A = w2.shape[1]
    Hp = _round_up(H, 128)
    if Hp != H:
        w1 = jnp.concatenate([w1, jnp.zeros((D, Hp - H), w1.dtype)], axis=1)
        b1 = jnp.concatenate([b1, jnp.zeros((1, Hp - H), b1.dtype)], axis=1)
        w2 = jnp.concatenate([w2, jnp.zeros((Hp - H, A), w2.dtype)], axis=0)
    return w1, b1, w2


def _mlp_logits(x_ref, w1_ref, b1_ref, w2_ref, b2_ref):
    # Hidden layer: Linear(D, Hp) + ReLU (MXU matmul, f32 accumulate, VPU max).
    h = jnp.dot(x_ref[...], w1_ref[...], preferred_element_type=jnp.float32)
    h = jnp.maximum(h + b1_ref[...], 0.0)
    # Output layer: Linear(Hp, A) -> logits.
    out = jnp.dot(h, w2_ref[...], preferred_element_type=jnp.float32)
    return out + b2_ref[...]


def politica_nes_logits_kernel(x_ref, w1_ref, b1_ref, w2_ref, b2_ref, o_ref):
    o_ref[...] = _mlp_logits(x_ref, w1_ref, b1_ref, w2_ref, b2_ref).astype(o_ref.dtype)


def politica_nes_action_kernel(x_ref, w1_ref, b1_ref, w2_ref, b2_ref, a_ref):
    # Logits never leave VMEM; only the argmax (int32 per row) is written out.
    logits = _mlp_logits(x_ref, w1_ref, b1_ref, w2_ref, b2_ref)
    num_a = logits.shape[1]
    col = jax.lax.broadcasted_iota(jnp.int32, logits.shape, 1)
    mx = jnp.max(logits, axis=1, keepdims=True)
    cand = jnp.where(logits == mx, col, jnp.int32(num_a))  # first-max tie-break
    a_ref[...] = jnp.min(cand, axis=1, keepdims=True)


def _common_specs(tm, D, Hp, A):
    # x tiled over the batch axis; weights & biases mapped to block (0, 0) so
    # they are DMA'd once and stay VMEM-resident across all grid steps.
    return [
        pl.BlockSpec((tm, D), lambda i: (i, 0)),
        pl.BlockSpec((D, Hp), lambda i: (0, 0)),
        pl.BlockSpec((1, Hp), lambda i: (0, 0)),
        pl.BlockSpec((Hp, A), lambda i: (0, 0)),
        pl.BlockSpec((1, A), lambda i: (0, 0)),
    ]


def _forward(x, w1, b1, w2, b2):
    B, D = x.shape
    A = w2.shape[1]
    w1, b1, w2 = _pad_hidden(w1, b1, w2)
    Hp = w1.shape[1]
    tm = _pick_tile(B)
    return pl.pallas_call(
        politica_nes_logits_kernel,
        out_shape=jax.ShapeDtypeStruct((B, A), jnp.float32),
        grid_spec=pltpu.PrefetchScalarGridSpec(
            num_scalar_prefetch=0,
            grid=(pl.cdiv(B, tm),),
            in_specs=_common_specs(tm, D, Hp, A),
            out_specs=pl.BlockSpec((tm, A), lambda i: (i, 0)),
        ),
        compiler_params=pltpu.CompilerParams(
            dimension_semantics=("parallel",),  # v7x: shard batch over both TCs
        ),
    )(x, w1, b1, w2, b2)


def _actions(x, w1, b1, w2, b2):
    B, D = x.shape
    A = w2.shape[1]
    w1, b1, w2 = _pad_hidden(w1, b1, w2)
    Hp = w1.shape[1]
    tm = _pick_tile(B)
    acts = pl.pallas_call(
        politica_nes_action_kernel,
        out_shape=jax.ShapeDtypeStruct((B, 1), jnp.int32),
        grid_spec=pltpu.PrefetchScalarGridSpec(
            num_scalar_prefetch=0,
            grid=(pl.cdiv(B, tm),),
            in_specs=_common_specs(tm, D, Hp, A),
            out_specs=pl.BlockSpec((tm, 1), lambda i: (i, 0)),
        ),
        compiler_params=pltpu.CompilerParams(
            dimension_semantics=("parallel",),
        ),
    )(x, w1, b1, w2, b2)
    return acts[:, 0]


# JIT'ed public entry points.
politica_nes_forward = jax.jit(_forward)
politica_nes_actions = jax.jit(_actions)


def init_params(key, dimension_entrada, num_acciones_salida, hidden=64):
    """Deterministic init matching PyTorch Linear's U(-1/sqrt(fan_in), 1/sqrt(fan_in))."""
    k1, k2, k3, k4 = jax.random.split(key, 4)
    lim1 = 1.0 / jnp.sqrt(jnp.float32(dimension_entrada))
    lim2 = 1.0 / jnp.sqrt(jnp.float32(hidden))
    w1 = jax.random.uniform(k1, (dimension_entrada, hidden), jnp.float32, -lim1, lim1)
    b1 = jax.random.uniform(k2, (1, hidden), jnp.float32, -lim1, lim1)
    w2 = jax.random.uniform(k3, (hidden, num_acciones_salida), jnp.float32, -lim2, lim2)
    b2 = jax.random.uniform(k4, (1, num_acciones_salida), jnp.float32, -lim2, lim2)
    return w1, b1, w2, b2


def seleccionar_accion(estado, params):
    """Equivalent of PoliticaNES.seleccionar_accion (single-state argmax action)."""
    # TODO(synk): in a real NES loop, batch the whole perturbation population /
    # env states into ONE politica_nes_actions call instead of per-state host syncs.
    x = jnp.asarray(estado, jnp.float32).reshape(1, -1)
    return int(politica_nes_actions(x, *params)[0])


if __name__ == "__main__":
    dimension_entrada = 32
    num_acciones_salida = 4

    key = jax.random.PRNGKey(0)
    k_params, k_xb, k_xs = jax.random.split(key, 3)
    params = init_params(k_params, dimension_entrada, num_acciones_salida)
    w1, b1, w2, b2 = params

    # Small NES-population batch that exercises a 2-step grid with a ragged
    # last block (B=50, tm=32), plus the tiny batch=2 sanity case (B < tile).
    x_pop = jax.random.normal(k_xb, (50, dimension_entrada), jnp.float32)
    x_small = jax.random.normal(k_xs, (2, dimension_entrada), jnp.float32)

    for x in (x_pop, x_small):
        logits = jax.block_until_ready(politica_nes_forward(x, *params))
        ref = jnp.maximum(x @ w1 + b1, 0.0) @ w2 + b2
        assert logits.shape == (x.shape[0], num_acciones_salida)
        assert jnp.allclose(logits, ref, atol=1e-5, rtol=1e-5)

        acts = jax.block_until_ready(politica_nes_actions(x, *params))
        assert acts.shape == (x.shape[0],)
        assert jnp.array_equal(acts, jnp.argmax(ref, axis=1).astype(jnp.int32))

    # Single-state path (API parity with PoliticaNES.seleccionar_accion).
    ref0 = jnp.maximum(x_small[0:1] @ w1 + b1, 0.0) @ w2 + b2
    assert seleccionar_accion(x_small[0], params) == int(jnp.argmax(ref0, axis=1)[0])

    print("KERNEL_OK")
</pallas_src>

<mosaic_0001>
module attributes {stable_mosaic.version = 11 : i64} {
  func.func @politica_nes_logits_kernel(%arg0: i32, %arg1: memref<32x32xf32, #tpu.memory_space<vmem>>, %arg2: memref<32x128xf32, #tpu.memory_space<vmem>>, %arg3: memref<1x128xf32, #tpu.memory_space<vmem>>, %arg4: memref<128x4xf32, #tpu.memory_space<vmem>>, %arg5: memref<1x4xf32, #tpu.memory_space<vmem>>, %arg6: memref<32x4xf32, #tpu.memory_space<vmem>>) attributes {dimension_semantics = [#tpu.dimension_semantics<parallel>], iteration_bounds = array<i64: 2>, scalar_prefetch = 0 : i64, scratch_operands = 0 : i64, tpu.core_type = #tpu.core_type<tc>, window_params = [{transform_indices = @transform_0, window_bounds = array<i64: 32, 32>}, {pipeline_mode = #tpu.pipeline_mode<synchronous>, transform_indices = @transform_1, window_bounds = array<i64: 32, 128>}, {pipeline_mode = #tpu.pipeline_mode<synchronous>, transform_indices = @transform_2, window_bounds = array<i64: 1, 128>}, {pipeline_mode = #tpu.pipeline_mode<synchronous>, transform_indices = @transform_3, window_bounds = array<i64: 128, 4>}, {pipeline_mode = #tpu.pipeline_mode<synchronous>, transform_indices = @transform_4, window_bounds = array<i64: 1, 4>}, {transform_indices = @transform_5, window_bounds = array<i64: 32, 4>}]} {
    %c0 = arith.constant 0 : index
    %c0_0 = arith.constant 0 : index
    %0 = vector.load %arg1[%c0, %c0_0] : memref<32x32xf32, #tpu.memory_space<vmem>>, vector<32x32xf32>
    %c0_1 = arith.constant 0 : index
    %c0_2 = arith.constant 0 : index
    %1 = vector.load %arg2[%c0_1, %c0_2] : memref<32x128xf32, #tpu.memory_space<vmem>>, vector<32x128xf32>
    %cst = arith.constant dense<0.000000e+00> : vector<32x128xf32>
    %2 = tpu.matmul %0, %1, %cst {dimension_numbers = #tpu.dot_dimension_numbers<[1], [0], [0], [1], [0, 0, 1, 1], [], []>} : vector<32x32xf32>, vector<32x128xf32>, vector<32x128xf32> -> vector<32x128xf32>
    %c0_3 = arith.constant 0 : index
    %c0_4 = arith.constant 0 : index
    %3 = vector.load %arg3[%c0_3, %c0_4] : memref<1x128xf32, #tpu.memory_space<vmem>>, vector<1x128xf32>
    %4 = vector.broadcast %3 : vector<1x128xf32> to vector<32x128xf32>
    %5 = arith.addf %2, %4 : vector<32x128xf32>
    %cst_5 = arith.constant 0.000000e+00 : f32
    %6 = vector.broadcast %cst_5 : f32 to vector<32x128xf32>
    %7 = arith.maximumf %5, %6 : vector<32x128xf32>
    %c0_6 = arith.constant 0 : index
    %c0_7 = arith.constant 0 : index
    %8 = vector.load %arg4[%c0_6, %c0_7] : memref<128x4xf32, #tpu.memory_space<vmem>>, vector<128x4xf32>
    %cst_8 = arith.constant dense<0.000000e+00> : vector<32x4xf32>
    %9 = tpu.matmul %7, %8, %cst_8 {dimension_numbers = #tpu.dot_dimension_numbers<[1], [0], [0], [1], [0, 0, 1, 1], [], []>} : vector<32x128xf32>, vector<128x4xf32>, vector<32x4xf32> -> vector<32x4xf32>
    %c0_9 = arith.constant 0 : index
    %c0_10 = arith.constant 0 : index
    %10 = vector.load %arg5[%c0_9, %c0_10] : memref<1x4xf32, #tpu.memory_space<vmem>>, vector<1x4xf32>
    %11 = vector.broadcast %10 : vector<1x4xf32> to vector<32x4xf32>
    %12 = arith.addf %9, %11 : vector<32x4xf32>
    %c0_11 = arith.constant 0 : index
    %c0_12 = arith.constant 0 : index
    %13 = vector.load %arg6[%c0_11, %c0_12] : memref<32x4xf32, #tpu.memory_space<vmem>>, vector<32x4xf32>
    tpu.vector_store %arg6[%c0_11, %c0_12], %12 {strides = array<i32>} : memref<32x4xf32, #tpu.memory_space<vmem>>, vector<32x4xf32>,
    return
  }
  func.func @transform_0(%arg0: i32) -> (i32, i32) {
    %c0_i32 = arith.constant 0 : i32
    %c0_i32_0 = arith.constant 0 : i32
    return %arg0, %c0_i32 : i32, i32
  }
  func.func @transform_1(%arg0: i32) -> (i32, i32) {
    %c0_i32 = arith.constant 0 : i32
    %c0_i32_0 = arith.constant 0 : i32
    %c0_i32_1 = arith.constant 0 : i32
    return %c0_i32, %c0_i32_0 : i32, i32
  }
  func.func @transform_2(%arg0: i32) -> (i32, i32) {
    %c0_i32 = arith.constant 0 : i32
    %c0_i32_0 = arith.constant 0 : i32
    %c0_i32_1 = arith.constant 0 : i32
    return %c0_i32, %c0_i32_0 : i32, i32
  }
  func.func @transform_3(%arg0: i32) -> (i32, i32) {
    %c0_i32 = arith.constant 0 : i32
    %c0_i32_0 = arith.constant 0 : i32
    %c0_i32_1 = arith.constant 0 : i32
    return %c0_i32, %c0_i32_0 : i32, i32
  }
  func.func @transform_4(%arg0: i32) -> (i32, i32) {
    %c0_i32 = arith.constant 0 : i32
    %c0_i32_0 = arith.constant 0 : i32
    %c0_i32_1 = arith.constant 0 : i32
    return %c0_i32, %c0_i32_0 : i32, i32
  }
  func.func @transform_5(%arg0: i32) -> (i32, i32) {
    %c0_i32 = arith.constant 0 : i32
    %c0_i32_0 = arith.constant 0 : i32
    return %arg0, %c0_i32 : i32, i32
  }
}

</mosaic_0001>

<bundles_post_ra>
// kernel: _forward.1
= control target key start
LH: loop header
LB: loop body
LE: loop exit
PB: predicated region body
PF: predicated region fallthrough
CT: control target
= control target key end

     0   :  { %s857_s18 = smov 0   ;;  %s859_s19 = smov 0   ;;  %s1033_s0 = inlined_call_operand.vmem [shape: f32[50,32], index: 0, kind: input, shape index: {}]   ;;  %s1034_s1 = inlined_call_operand.vmem [shape: f32[32,128], index: 1, kind: input, shape index: {}]   ;;  %s1035_s2 = inlined_call_operand.vmem [shape: f32[1,128], index: 2, kind: input, shape index: {}]   ;;  %s1036_s3 = inlined_call_operand.vmem [shape: f32[128,4], index: 3, kind: input, shape index: {}]   ;;  %s1037_s4 = inlined_call_operand.vmem [shape: f32[1,4], index: 4, kind: input, shape index: {}]   ;;  %s1038_s5 = inlined_call_operand.vmem [shape: f32[50,4], index: 5, kind: output, shape index: {}]  }
   0x1   :  { %s861_s20 = smov 0  }
   0x2 LB: > { %s870_s21 = sadd.s32 4294967295, %s793_s20   ;;  %s872_s22 = sadd.s32 1, %s793_s20   ;;  %s793_s20 = sphi %s861_s20, %s1045_s20   ;;  %s789_s19 = sphi %s859_s19, %s1044_s19   ;;  %s785_s18 = sphi %s857_s18, %s1043_s18  }
   0x3   : > { %s129_s23 = ssub.s32 %s793_s20, %s872_s22  ;;  %s132_s24 = sadd.s32 1, %s789_s19 }
   0x4   : > { %p130_p0 = scmp.eq.s32.totalorder %s129_s23, 0  ;;  %p142_p1 = scmp.ne.s32.totalorder %s789_s19, %s785_s18 }
   0x5   : > { %p143_p2 = scmp.eq.s32.totalorder %s870_s21, 1  ;;  %p589_p3 = scmp.ge.s32.totalorder %s793_s20, 1 }
   0x6   : > { %s880_s25 = scalar_select %p130_p0, %s789_s19, %s132_s24  }
   0x7   : > { %p882_p4 = por %p143_p2, %p142_p1  ;;  %p196_p5 = scmp.lt.s32.totalorder %s793_s20, 3 }
   0x9   : > { %p197_p6 = pnand %p589_p3, %p196_p5 }
   0xa   : > { %s893_s6 = sshll.u32 (!%p197_p6), %s870_s21, 2  ;;  %s224_s14 = sand.u32 (!%p197_p6), 1, %s785_s18  }
   0xb   : > { %200 = sbr.rel (%p197_p6) target bundleno = 352 (0x160), region = 40  ;;  %p232_p7 = scmp.lt.s32.totalorder (!%p197_p6), %s893_s6, 6 }
   0xc   : > { %s590_s15 = sshll.u32 (!%p197_p6), %s224_s14, 5 }
  0x10   : > { %v253_v0 = vld [vmem:[%s1034_s1 + $0x18] sm:$0xff]  ;;  %v252_v1 = vld [vmem:[%s1034_s1 + $0x10] sm:$0xff]  ;;  %v251_v4 = vld [vmem:[%s1034_s1 + $0x8] sm:$0xff]  ;;  %s233_s13 = scalar_select %p232_p7, %s893_s6, 6  ;;  %vm258_vm0 = vcmask 261120   ;;  %vm353_vm1 = vcmask 31744  }
  0x11   : > { %283 = vmatpush.msra.mxu0 %v253_v0  ;;  %v319_v2 = vld [vmem:[%s1036_s3 + $0x78] sm:$0xff]  ;;  %v318_v3 = vld [vmem:[%s1036_s3 + $0x70] sm:$0xff]  ;;  %v317_v5 = vld [vmem:[%s1036_s3 + $0x68] sm:$0xff]  ;;  %s366_s18 = ssub.s32 (%p882_p4), 7, %s893_s6  ;;  %s614_s23 = sshll.u32 (%p882_p4), %s870_s21, 5 }
  0x12   : > { %324 = vmatpush.msra.mxu1 %v319_v2  ;;  %617 = vmatpush.msra.mxu2 %v319_v2  ;;  %v250_v6 = vld [vmem:[%s1034_s1] sm:$0xff]  ;;  %s592_s20 = sshll.u32 %s233_s13, 3  ;;  %v315_v9 = vld [vmem:[%s1036_s3 + $0x58] sm:$0xff]  ;;  %v314_v10 = vld [vmem:[%s1036_s3 + $0x50] sm:$0xff]  ;;  %p367_p8 = scmp.lt.s32.totalorder (%p882_p4), %s366_s18, 4 }
  0x13   : > { %284 = vmatpush.msra.mxu0 %v252_v1  ;;  %618 = vmatpush.msra.mxu3 %v319_v2  ;;  %v316_v7 = vld [vmem:[%s1036_s3 + $0x60] sm:$0xff]  ;;  %s918_s29 = scalar_lea.vmem %s1033_s0, %s592_s20  ;;  %v313_v11 = vld [vmem:[%s1036_s3 + $0x48] sm:$0xff]  ;;  %v311_v14 = vld [vmem:[%s1036_s3 + $0x38] sm:$0xff]  ;;  %s971_s20 = scalar_lea.vmem [#allocation2], %s590_s15  }
  0x14   : > { %325 = vmatpush.msra.mxu1 %v318_v3  ;;  %619 = vmatpush.msra.mxu2 %v318_v3  ;;  %v246_v8 = vld [vmem:[%s918_s29] sm:$0xff]  ;;  %v247_v12 = vld [vmem:[%s918_s29 + $0x8] sm:$0xff]  ;;  %v310_v15 = vld [vmem:[%s1036_s3 + $0x30] sm:$0xff]  ;;  %s984_s28 = scalar_lea.vmem (%p882_p4), %s1038_s5, %s614_s23  }
  0x15   : > { %285 = vmatpush.msra.mxu0 %v251_v4  ;;  %620 = vmatpush.msra.mxu3 %v318_v3  ;;  %v312_v13 = vld [vmem:[%s1036_s3 + $0x40] sm:$0xff]  ;;  %v309_v16 = vld [vmem:[%s1036_s3 + $0x28] sm:$0xff]  ;;  %v248_v17 = vld [vmem:[%s918_s29 + $0x10] sm:$0xff] }
  0x16   : > { %326 = vmatpush.msra.mxu1 %v317_v5  ;;  %621 = vmatpush.msra.mxu2 %v317_v5  ;;  %v308_v18 = vld [vmem:[%s1036_s3 + $0x20] sm:$0xff]  ;;  %v307_v19 = vld [vmem:[%s1036_s3 + $0x18] sm:$0xff]  ;;  %v306_v21 = vld [vmem:[%s1036_s3 + $0x10] sm:$0xff] }
  0x17   : > { %286 = vmatpush.msra.mxu0 %v250_v6  ;;  %622 = vmatpush.msra.mxu3 %v317_v5  ;;  %v249_v20 = vld [vmem:[%s918_s29 + $0x18] sm:$0xff]  ;;  %v305_v22 = vld [vmem:[%s1036_s3 + $0x8] sm:$0xff]  ;;  %v304_v23 = vld [vmem:[%s1036_s3] sm:$0xff] }
  0x18   : > { %593 = vmatmul.msk.f32.vlgmr.msra.gmra.mxu0 %vm258_vm0, %v246_v8  ;;  %327 = vmatpush.msra.mxu1 %v316_v7  ;;  %v737_v24 = vld [vmem:[%s1035_s2] ss:$0 sm:$0xff] }
  0x19   : > { %623 = vmatpush.msra.mxu2 %v316_v7  ;;  %624 = vmatpush.msra.mxu3 %v316_v7  ;;  %v738_v37 = vld [vmem:[%s1037_s4] ss:$0 sm:$0xff] }
  0x1a   : > { %328 = vmatpush.msra.mxu1 %v315_v9 }
  0x1b   : > { %625 = vmatpush.msra.mxu2 %v315_v9  ;;  %626 = vmatpush.msra.mxu3 %v315_v9 }
  0x1c   : > { %329 = vmatpush.msra.mxu1 %v314_v10 }
  0x1d   : > { %627 = vmatpush.msra.mxu2 %v314_v10  ;;  %628 = vmatpush.msra.mxu3 %v314_v10 }
  0x1e   : > { %330 = vmatpush.msra.mxu1 %v313_v11 }
  0x1f   : > { %629 = vmatpush.msra.mxu2 %v313_v11  ;;  %630 = vmatpush.msra.mxu3 %v313_v11 }
  0x20   : > { %594 = vmatmul.msk.f32.gmra.mxu0 %vm258_vm0, %v247_v12  ;;  %331 = vmatpush.msra.mxu1 %v312_v13 }
  0x21   : > { %631 = vmatpush.msra.mxu2 %v312_v13  ;;  %632 = vmatpush.msra.mxu3 %v312_v13 }
  0x22   : > { %332 = vmatpush.msra.mxu1 %v311_v14 }
  0x23   : > { %633 = vmatpush.msra.mxu2 %v311_v14  ;;  %634 = vmatpush.msra.mxu3 %v311_v14 }
  0x24   : > { %333 = vmatpush.msra.mxu1 %v310_v15 }
  0x25   : > { %635 = vmatpush.msra.mxu2 %v310_v15  ;;  %636 = vmatpush.msra.mxu3 %v310_v15 }
  0x26   : > { %334 = vmatpush.msra.mxu1 %v309_v16 }
  0x27   : > { %637 = vmatpush.msra.mxu2 %v309_v16  ;;  %638 = vmatpush.msra.mxu3 %v309_v16 }
  0x28   : > { %595 = vmatmul.msk.f32.gmra.mxu0 %vm258_vm0, %v248_v17  ;;  %335 = vmatpush.msra.mxu1 %v308_v18 }
  0x29   : > { %639 = vmatpush.msra.mxu2 %v308_v18  ;;  %640 = vmatpush.msra.mxu3 %v308_v18 }
  0x2a   : > { %336 = vmatpush.msra.mxu1 %v307_v19 }
  0x2b   : > { %641 = vmatpush.msra.mxu2 %v307_v19  ;;  %642 = vmatpush.msra.mxu3 %v307_v19 }
  0x2c   : > { %337 = vmatpush.msra.mxu1 %v306_v21 }
  0x2d   : > { %643 = vmatpush.msra.mxu2 %v306_v21  ;;  %644 = vmatpush.msra.mxu3 %v306_v21 }
  0x2e   : > { %338 = vmatpush.msra.mxu1 %v305_v22 }
  0x2f   : > { %645 = vmatpush.msra.mxu2 %v305_v22  ;;  %646 = vmatpush.msra.mxu3 %v305_v22 }
  0x30   : > { %596 = vmatmul.msk.f32.gmra.mxu0 %vm258_vm0, %v249_v20  ;;  %339 = vmatpush.msra.mxu1 %v304_v23 }
  0x31   : > { %647 = vmatpush.msra.mxu2 %v304_v23  ;;  %648 = vmatpush.msra.mxu3 %v304_v23 }
  0x95   : > { %v288_v25 = vpop.f32.mrf.mxu0 }
  0x96   : > { %v289_v26 = vadd.f32 %v737_v24, %v288_v25 }
  0x98   : > { %v300_v27 = vmax.f32 %v289_v26, 0.0 }
  0x9a   : > { %340 = vmatmul.f32.vlgmr.msra.gmra.mxu1 %v300_v27 }
  0x9d   : > { %v291_v28 = vpop.f32.mrf.mxu0 }
  0x9e   : > { %v292_v29 = vadd.f32 %v737_v24, %v291_v28 }
  0xa0   : > { %v301_v30 = vmax.f32 %v292_v29, 0.0 }
  0xa2   : > { %343 = vmatmul.f32.vlgmr.msra.gmra.mxu2 %v301_v30 }
  0xa5   : > { %v294_v31 = vpop.f32.mrf.mxu0 }
  0xa6   : > { %v295_v32 = vadd.f32 %v737_v24, %v294_v31 }
  0xa8   : > { %v302_v33 = vmax.f32 %v295_v32, 0.0 }
  0xaa   : > { %346 = vmatmul.f32.vlgmr.msra.gmra.mxu3 %v302_v33 }
  0xad   : > { %v297_v34 = vpop.f32.mrf.mxu0 }
  0xae   : > { %v298_v35 = vadd.f32 %v737_v24, %v297_v34 }
  0xb0   : > { %v303_v36 = vmax.f32 %v298_v35, 0.0 }
  0xb2   : > { %349 = vmatmul.f32.gmra.mxu3 %v303_v36 }
 0x117   : > { %v341_v38 = vpop.f32.mrf.mxu1 }
 0x118   : > { %v342_v39 = vadd.f32 %v738_v37, %v341_v38 }
 0x11a   : > { %354 = vst.msk [vmem:[%s971_s20] sm:$0xff] %vm353_vm1, %v342_v39 }
 0x125   : > { %v344_v40 = vpop.f32.mrf.mxu2 }
 0x126   : > { %v345_v41 = vadd.f32 %v738_v37, %v344_v40 }
 0x128   : > { %355 = vst.msk [vmem:[%s971_s20 + $0x8] sm:$0xff] %vm353_vm1, %v345_v41 }
 0x12d   : > { %v347_v42 = vpop.f32.mrf.mxu3 }
 0x12e   : > { %v348_v43 = vadd.f32 %v738_v37, %v347_v42 }
 0x130   : > { %356 = vst.msk [vmem:[%s971_s20 + $0x10] sm:$0xff] %vm353_vm1, %v348_v43 }
 0x134   : > { %364 = sbr.rel (!%p882_p4) target bundleno = 352 (0x160), region = 44 }
 0x135   : > { %v350_v44 = vpop.f32.mrf.mxu3 }
 0x136   : > { %v351_v45 = vadd.f32 %v738_v37, %v350_v44 }
 0x138   : > { %357 = vst.msk [vmem:[%s971_s20 + $0x18] sm:$0xff] %vm353_vm1, %v351_v45 }
 0x139   : > { %s1047_s18 = smov (!%p367_p8, %s366_s18), 4 }
 0x13a   : > { %s599_s30 = sshll.u32 %s1047_s18, 3 }
 0x13b   : > { %p602_p9 = scmp.eq.s32.totalorder %s599_s30, 0 }
 0x13c   : > { %s990_s7 = sshrl.u32 (!%p602_p9), %s1047_s18, 2 }
 0x13d   : > { %375 = sbr.rel (%p602_p9) target bundleno = 352 (0x160), region = 48  ;;  %p603_p10 = scmp.le.s32.totalorder (!%p602_p9), %s990_s7, 0 }
 0x142   : > { %542 = sbr.rel (%p603_p10) target bundleno = 335 (0x14f), region = 124  ;;  %s1040_s21 = smov (!%p603_p10), %s984_s28 }
 0x143   : > { %s1041_s26 = smov (!%p603_p10), %s971_s20  ;;  %s999_s6 = smov (!%p603_p10), 0  }
 0x144   : > { %s807_s8 = smov (!%p603_p10), 0  }
 0x147 LB: >> { %v444_v46 = vld [vmem:[%s801_s26] sm:$0xff]  ;;  %v446_v47 = vld [vmem:[%s801_s26 + $0x8] sm:$0xff]  ;;  %v448_v48 = vld [vmem:[%s801_s26 + $0x10] sm:$0xff]  ;;  %s452_s9 = sadd.s32 1, %s805_s6  ;;  %s438_s8 = sadd.s32 1, %s809_s8   ;;  %s809_s8 = sphi %s807_s8, %s438_s8   ;;  %s805_s6 = sphi %s999_s6, %s1042_s6   ;;  %s801_s26 = sphi %s1041_s26, %s457_s26   ;;  %s797_s21 = sphi %s1040_s21, %s458_s21  }
 0x148   : >> { %445 = vst [vmem:[%s797_s21] sm:$0xff] %v444_v46  ;;  %v450_v49 = vld [vmem:[%s801_s26 + $0x18] sm:$0xff]  ;;  %p453_p11 = scmp.ge.s32.totalorder %s452_s9, %s990_s7  ;;  %p437_p12 = scmp.ge.s32.totalorder %s438_s8, %s990_s7 }
 0x149   : >> { %447 = vst [vmem:[%s797_s21 + $0x8] sm:$0xff] %v446_v47 }
 0x14a   : >> { %449 = vst [vmem:[%s797_s21 + $0x10] sm:$0xff] %v448_v48  ;;  %s1049_s9 = smov (%p453_p11, %s452_s9), 0  ;;  %440 = sbr.rel (!%p437_p12) target bundleno = 327 (0x147), region = 130 }
 0x14b   : >> { %451 = vst [vmem:[%s797_s21 + $0x18] sm:$0xff] %v450_v49  ;;  %s604_s10 = sshll.u32 %s1049_s9, 5  ;;  %s1042_s6 = smov %s1049_s9 }
 0x14c   : >> { %s457_s26 = scalar_lea.vmem %s971_s20, %s604_s10 [#allocation2]   ;;  %s458_s21 = scalar_lea.vmem %s984_s28, %s604_s10  }
 0x14f PF: > { %s1015_s11 = sand.u32 3, %s1047_s18   ;;  %s615_s12 = sshll.u32 %s990_s7, 5 }
 0x150   : > { %s463_s29 = scalar_lea.vmem %s971_s20, %s615_s12 [#allocation2]   ;;  %s465_s13 = scalar_lea.vmem %s984_s28, %s615_s12  }
 0x151   : > { %p609_p13 = scmp.le.s32.totalorder %s1015_s11, 0 }
 0x152   : > { %s811_s14 = smov (!%p609_p13), %s465_s13   ;;  %s815_s15 = smov (!%p609_p13), %s463_s29  }
 0x153   : > { %556 = sbr.rel (%p609_p13) target bundleno = 352 (0x160), region = 135  ;;  %s819_s16 = smov (!%p609_p13), 0  }
 0x154   : > { %s823_s17 = smov (!%p609_p13), 0  }
 0x158 LB: >> { %v475_v50 = vld [vmem:[%s817_s15] sm:$0xff]  ;;  %s477_s18 = sadd.s32 1, %s821_s16  ;;  %s469_s17 = sadd.s32 1, %s825_s17   ;;  %s825_s17 = sphi %s823_s17, %s469_s17   ;;  %s821_s16 = sphi %s819_s16, %s820_s16   ;;  %s817_s15 = sphi %s815_s15, %s482_s15   ;;  %s813_s14 = sphi %s811_s14, %s483_s14  }
 0x159   : >> { %476 = vst [vmem:[%s813_s14] sm:$0xff] %v475_v50  ;;  %p478_p0 = scmp.ge.s32.totalorder %s477_s18, %s1015_s11  ;;  %p468_p1 = scmp.ge.s32.totalorder %s469_s17, %s1015_s11 }
 0x15b   : >> { %s1051_s18 = smov (%p478_p0, %s477_s18), 0  ;;  %471 = sbr.rel (!%p468_p1) target bundleno = 344 (0x158), region = 141 }
 0x15c   : >> { %s610_s20 = sshll.u32 %s1051_s18, 3  ;;  %s820_s16 = smov %s1051_s18  }
 0x15d   : >> { %s482_s15 = scalar_lea.vmem %s463_s29, %s610_s20 [#allocation2]   ;;  %s483_s14 = scalar_lea.vmem %s465_s13, %s610_s20  }
 0x160 PF: > { %p12_p2 = scmp.ge.s32.totalorder %s872_s22, 4   ;;  %s1043_s18 = smov %s789_s19 }
 0x161   : > { %s1044_s19 = smov %s880_s25  ;;  %s1045_s20 = smov %s872_s22 }
 0x162   :  { %14 = sbr.rel (!%p12_p2) target bundleno = 2 (0x2), region = 152 }

</bundles_post_ra>
